<compile_context>
chip_gen: v6e
topology: v6e:2x2x1
jax: 0.10.0
libtpu: 0.0.40
codegen_flags: <defaults>
</compile_context>

<pallas_src>
import functools

import jax
import jax.numpy as jnp
from jax import lax
from jax.experimental import pallas as pl
from jax.experimental.pallas import tpu as pltpu


# Headroom for large production maps; per-batch full-extent slabs stay well
# below this on v5e / v6e / v7x, so no L tiling is needed in any pass.
_VMEM_LIMIT_BYTES = 32 << 20


def _offsets(cs):
    offs, o = [], 0
    for c in cs:
        offs.append(o)
        o += c
    return tuple(offs), o


# ----------------------------------------------------------------------------
# Pass 1 (1 launch): per-pixel channel mean & max for all five scales.
#   inputs : t_i  (B, C_i, L_i)      outputs: st_i (B, 2, L_i)
# ----------------------------------------------------------------------------
def _stats_kernel(n_scales, *refs):
    t_refs = refs[:n_scales]
    o_refs = refs[n_scales:]
    s = pl.program_id(1)
    for i in range(n_scales):
        def _branch(t_ref=t_refs[i], o_ref=o_refs[i]):
            x = t_ref[...].astype(jnp.float32)                       # (1,C,L)
            # two direct row stores (no concatenate / relayout)
            o_ref[:, 0:1, :] = jnp.mean(x, axis=1, keepdims=True)
            o_ref[:, 1:2, :] = jnp.max(x, axis=1, keepdims=True)
        pl.when(s == i)(_branch)


def _stats_pass(ts3d):
    n = len(ts3d)
    b = ts3d[0].shape[0]
    in_specs = [pl.BlockSpec((1, t.shape[1], t.shape[2]),
                             lambda bi, si: (bi, 0, 0)) for t in ts3d]
    out_specs = tuple(pl.BlockSpec((1, 2, t.shape[2]),
                                   lambda bi, si: (bi, 0, 0)) for t in ts3d)
    out_shape = tuple(jax.ShapeDtypeStruct((b, 2, t.shape[2]), jnp.float32)
                      for t in ts3d)
    return pl.pallas_call(
        functools.partial(_stats_kernel, n),
        out_shape=out_shape,
        grid_spec=pltpu.PrefetchScalarGridSpec(
            num_scalar_prefetch=0, grid=(b, n),
            in_specs=in_specs, out_specs=out_specs),
        compiler_params=pltpu.CompilerParams(
            dimension_semantics=("parallel", "arbitrary"),
            vmem_limit_bytes=_VMEM_LIMIT_BYTES),
    )(*ts3d)


# ----------------------------------------------------------------------------
# Pass 2 (1 launch): pooled means of (1 + sigmoid(satt_logits)) * t for all
# five scales, normalized in-kernel and assembled into one (B, Csum, 1) array.
# ----------------------------------------------------------------------------
def _pool_kernel(cs, ls, offs, *refs):
    n = len(cs)
    t_refs = refs[:n]
    s_refs = refs[n:2 * n]
    o_ref = refs[2 * n]
    s = pl.program_id(1)

    @pl.when(s == 0)
    def _():
        o_ref[...] = jnp.zeros_like(o_ref)

    for i in range(n):
        def _branch(t_ref=t_refs[i], s_ref=s_refs[i],
                    off=offs[i], c=cs[i], inv_l=1.0 / float(ls[i])):
            x = t_ref[...].astype(jnp.float32)                       # (1,C,L)
            sa = jax.nn.sigmoid(s_ref[...].astype(jnp.float32))      # (1,1,L)
            p = jnp.sum(x * (1.0 + sa), axis=-1, keepdims=True) * inv_l
            o_ref[:, off:off + c, :] = p                             # (1,C,1)
        pl.when(s == i)(_branch)


def _pool_pass(ts3d, slog3d, csum):
    n = len(ts3d)
    b = ts3d[0].shape[0]
    cs = tuple(t.shape[1] for t in ts3d)
    ls = tuple(t.shape[2] for t in ts3d)
    offs, _ = _offsets(cs)
    in_specs = ([pl.BlockSpec((1, t.shape[1], t.shape[2]),
                              lambda bi, si: (bi, 0, 0)) for t in ts3d]
                + [pl.BlockSpec((1, 1, t.shape[2]),
                                lambda bi, si: (bi, 0, 0)) for t in ts3d])
    return pl.pallas_call(
        functools.partial(_pool_kernel, cs, ls, offs),
        out_shape=jax.ShapeDtypeStruct((b, csum, 1), jnp.float32),
        grid_spec=pltpu.PrefetchScalarGridSpec(
            num_scalar_prefetch=0, grid=(b, n),
            in_specs=in_specs,
            out_specs=pl.BlockSpec((1, csum, 1), lambda bi, si: (bi, 0, 0))),
        compiler_params=pltpu.CompilerParams(
            dimension_semantics=("parallel", "arbitrary"),
            vmem_limit_bytes=_VMEM_LIMIT_BYTES),
    )(*ts3d, *slog3d)


# ----------------------------------------------------------------------------
# Pass 3 (1 launch): out_i = catt_i*(1+satt_i)*t_i + satt_i*t_i for all scales.
# catt is passed once as (B, Nout, 1); each branch slices its channel range on
# the sublane axis (no relayout) and broadcasts over the spatial lanes.
# ----------------------------------------------------------------------------
def _apply_kernel(cs, offs, *refs):
    n = len(cs)
    t_refs = refs[:n]
    s_refs = refs[n:2 * n]
    catt_ref = refs[2 * n]
    o_refs = refs[2 * n + 1:]
    s = pl.program_id(1)
    for i in range(n):
        def _branch(t_ref=t_refs[i], s_ref=s_refs[i], o_ref=o_refs[i],
                    off=offs[i], c=cs[i]):
            x = t_ref[...].astype(jnp.float32)                       # (1,C,L)
            sa = jax.nn.sigmoid(s_ref[...].astype(jnp.float32))      # (1,1,L)
            cw = catt_ref[:, off:off + c, :].astype(jnp.float32)     # (1,C,1)
            o_ref[...] = (x * (cw * (1.0 + sa) + sa)).astype(o_ref.dtype)
        pl.when(s == i)(_branch)


def _apply_pass(ts3d, slog3d, catt3d):
    n = len(ts3d)
    b = ts3d[0].shape[0]
    cs = tuple(t.shape[1] for t in ts3d)
    offs, nout = _offsets(cs)
    in_specs = ([pl.BlockSpec((1, t.shape[1], t.shape[2]),
                              lambda bi, si: (bi, 0, 0)) for t in ts3d]
                + [pl.BlockSpec((1, 1, t.shape[2]),
                                lambda bi, si: (bi, 0, 0)) for t in ts3d]
                + [pl.BlockSpec((1, nout, 1), lambda bi, si: (bi, 0, 0))])
    out_specs = tuple(pl.BlockSpec((1, t.shape[1], t.shape[2]),
                                   lambda bi, si: (bi, 0, 0)) for t in ts3d)
    out_shape = tuple(jax.ShapeDtypeStruct(t.shape, t.dtype) for t in ts3d)
    return pl.pallas_call(
        functools.partial(_apply_kernel, cs, offs),
        out_shape=out_shape,
        grid_spec=pltpu.PrefetchScalarGridSpec(
            num_scalar_prefetch=0, grid=(b, n),
            in_specs=in_specs, out_specs=out_specs),
        compiler_params=pltpu.CompilerParams(
            dimension_semantics=("parallel", "arbitrary"),
            vmem_limit_bytes=_VMEM_LIMIT_BYTES),
    )(*ts3d, *slog3d, catt3d)


# ----------------------------------------------------------------------------
# Module port
# ----------------------------------------------------------------------------
class SCAttBridge:
    """JAX/Pallas port of SC_Att_Bridge (split_att='fc')."""

    def __init__(self, c_list, key):
        self.c_list = list(c_list)
        csum = sum(c_list) - c_list[-1]
        self.csum = csum
        self.nout = sum(c_list[:5])
        ks = jax.random.split(key, 14)
        # Spatial_Att_Bridge shared Conv2d(2,1,7,stride=1,padding=9,dilation=3)
        self.sconv_w = 0.1 * jax.random.normal(ks[0], (1, 2, 7, 7), jnp.float32)
        self.sconv_b = 0.05 * jax.random.normal(ks[1], (1,), jnp.float32)
        # Channel_Att_Bridge get_all_att: Conv1d(1,1,3,padding=1,bias=False)
        self.allatt_w = 0.3 * jax.random.normal(ks[2], (3,), jnp.float32)
        # Five fc heads att_i: Linear(csum -> c_list[i])
        self.lin_w, self.lin_b = [], []
        for i in range(5):
            wi = jax.random.normal(ks[3 + 2 * i], (c_list[i], csum), jnp.float32)
            wi = wi / jnp.sqrt(jnp.float32(csum))
            bi = 0.1 * jax.random.normal(ks[4 + 2 * i], (c_list[i],), jnp.float32)
            self.lin_w.append(wi)
            self.lin_b.append(bi)
        # Fused head: (csum, Nout) weight, (Nout,) bias.
        self.w_all = jnp.concatenate([w.T for w in self.lin_w], axis=1)
        self.b_all = jnp.concatenate(self.lin_b, axis=0)
        # Fold get_all_att (k=3, pad=1, no bias) into the fc weights:
        # att_conv = band @ p  =>  p @ band.T @ w_all = p @ w_eff  (exact fusion).
        taps = self.allatt_w
        band = (taps[0] * jnp.eye(csum, k=-1)
                + taps[1] * jnp.eye(csum)
                + taps[2] * jnp.eye(csum, k=1))
        self.w_eff = band.T @ self.w_all                      # (csum, Nout)

    def __call__(self, t1, t2, t3, t4, t5):
        ts = [t1, t2, t3, t4, t5]
        b = ts[0].shape[0]
        ts3d = [t.reshape(t.shape[0], t.shape[1], t.shape[2] * t.shape[3])
                for t in ts]

        # ---- Pass 1 (Pallas): channel mean/max for all scales.
        stats = _stats_pass(ts3d)                             # 5 x (B,2,L_i)

        # ---- Shared 7x7 dilated conv on the tiny (B,2,H,W) stat maps.
        # TODO(synk): left to XLA — operands are KB-scale, below Pallas launch
        # break-even.  Sigmoid is applied later, inside the Pallas kernels.
        slog3d = []
        for t, st in zip(ts, stats):
            bb, _, h, w = t.shape
            y = lax.conv_general_dilated(
                st.reshape(bb, 2, h, w), self.sconv_w, window_strides=(1, 1),
                padding=((9, 9), (9, 9)), rhs_dilation=(3, 3),
                dimension_numbers=("NCHW", "OIHW", "NCHW"))
            slog3d.append((y + self.sconv_b.reshape(1, 1, 1, 1))
                          .reshape(bb, 1, h * w))

        # ---- Pass 2 (Pallas): pooled means of (1+satt)*t, one (B,Csum,1) out.
        pooled = _pool_pass(ts3d, slog3d, self.csum)          # (B,Csum,1)

        # ---- Channel head: single fused matmul+bias+sigmoid (tiny, XLA).
        # TODO(synk): head kept in XLA by design; get_all_att is folded into
        # w_eff so this is one (B,Csum)@(Csum,Nout) op, below launch break-even.
        att = pooled[:, :, 0]                                 # (B,Csum)
        catt = jax.nn.sigmoid(att @ self.w_eff + self.b_all)  # (B,Nout)
        catt3 = catt.reshape(b, self.nout, 1)

        # ---- Pass 3 (Pallas): out = catt*(1+satt)*t + satt*t.
        outs3d = _apply_pass(ts3d, slog3d, catt3)
        return tuple(o.reshape(t.shape) for o, t in zip(outs3d, ts))


# ----------------------------------------------------------------------------
# Pure-JAX reference (mirrors the PyTorch forward step by step)
# ----------------------------------------------------------------------------
def _ref_forward(m, ts):
    satts = []
    for t in ts:
        avg = jnp.mean(t, axis=1, keepdims=True)
        mx = jnp.max(t, axis=1, keepdims=True)
        a = jnp.concatenate([avg, mx], axis=1)
        a = lax.conv_general_dilated(a, m.sconv_w, (1, 1), ((9, 9), (9, 9)),
                                     rhs_dilation=(3, 3),
                                     dimension_numbers=("NCHW", "OIHW", "NCHW"))
        satts.append(jax.nn.sigmoid(a + m.sconv_b.reshape(1, 1, 1, 1)))
    r = list(ts)
    ts1 = [s * t for s, t in zip(satts, ts)]
    r_ = list(ts1)
    ts2 = [a + b for a, b in zip(ts1, r)]
    pools = [jnp.mean(t, axis=(2, 3)) for t in ts2]
    att = jnp.concatenate(pools, axis=1)
    pad = jnp.pad(att, ((0, 0), (1, 1)))
    att = (m.allatt_w[0] * pad[:, :-2]
           + m.allatt_w[1] * pad[:, 1:-1]
           + m.allatt_w[2] * pad[:, 2:])
    outs = []
    for t, rr, W, bv in zip(ts2, r_, m.lin_w, m.lin_b):
        ca = jax.nn.sigmoid(att @ W.T + bv)                   # (B, Ci)
        outs.append(ca[:, :, None, None] * t + rr)
    return tuple(outs)


if __name__ == "__main__":
    key = jax.random.PRNGKey(0)
    kp, kx = jax.random.split(key)

    c_list = [8, 16, 24, 32, 48, 64]          # csum = 128
    spatial = [32, 16, 16, 8, 8]
    bridge = SCAttBridge(c_list, kp)

    kxs = jax.random.split(kx, 5)
    xs = [jax.random.normal(kxs[i], (2, c_list[i], spatial[i], spatial[i]),
                            jnp.float32) for i in range(5)]

    outs = jax.block_until_ready(bridge(*xs))
    refs = _ref_forward(bridge, xs)

    for o, rref in zip(outs, refs):
        assert o.shape == rref.shape
        err = float(jnp.max(jnp.abs(o - rref)))
        assert jnp.allclose(o, rref, atol=1e-4, rtol=1e-4), err

    print("KERNEL_OK")
</pallas_src>

<mosaic_0001>
module attributes {stable_mosaic.version = 11 : i64} {
  func.func @_stats_kernel(%arg0: i32, %arg1: i32, %arg2: memref<1x8x1024xf32, #tpu.memory_space<vmem>>, %arg3: memref<1x16x256xf32, #tpu.memory_space<vmem>>, %arg4: memref<1x24x256xf32, #tpu.memory_space<vmem>>, %arg5: memref<1x32x64xf32, #tpu.memory_space<vmem>>, %arg6: memref<1x48x64xf32, #tpu.memory_space<vmem>>, %arg7: memref<1x2x1024xf32, #tpu.memory_space<vmem>>, %arg8: memref<1x2x256xf32, #tpu.memory_space<vmem>>, %arg9: memref<1x2x256xf32, #tpu.memory_space<vmem>>, %arg10: memref<1x2x64xf32, #tpu.memory_space<vmem>>, %arg11: memref<1x2x64xf32, #tpu.memory_space<vmem>>) attributes {dimension_semantics = [#tpu.dimension_semantics<parallel>, #tpu.dimension_semantics<arbitrary>], iteration_bounds = array<i64: 2, 5>, scalar_prefetch = 0 : i64, scratch_operands = 0 : i64, tpu.core_type = #tpu.core_type<tc>, window_params = [{transform_indices = @transform_0, window_bounds = array<i64: 1, 8, 1024>}, {transform_indices = @transform_1, window_bounds = array<i64: 1, 16, 256>}, {transform_indices = @transform_2, window_bounds = array<i64: 1, 24, 256>}, {transform_indices = @transform_3, window_bounds = array<i64: 1, 32, 64>}, {transform_indices = @transform_4, window_bounds = array<i64: 1, 48, 64>}, {transform_indices = @transform_5, window_bounds = array<i64: 1, 2, 1024>}, {transform_indices = @transform_6, window_bounds = array<i64: 1, 2, 256>}, {transform_indices = @transform_7, window_bounds = array<i64: 1, 2, 256>}, {transform_indices = @transform_8, window_bounds = array<i64: 1, 2, 64>}, {transform_indices = @transform_9, window_bounds = array<i64: 1, 2, 64>}]} {
    %c0_i32 = arith.constant 0 : i32
    %0 = arith.cmpi eq, %arg1, %c0_i32 : i32
    %1 = arith.extui %0 : i1 to i32
    %c0_i32_0 = arith.constant 0 : i32
    %2 = arith.cmpi ne, %1, %c0_i32_0 : i32
    scf.if %2 {
      %c0 = arith.constant 0 : index
      %c0_5 = arith.constant 0 : index
      %c0_6 = arith.constant 0 : index
      %15 = vector.load %arg2[%c0, %c0_5, %c0_6] : memref<1x8x1024xf32, #tpu.memory_space<vmem>>, vector<1x8x1024xf32>
      %cst = arith.constant dense<0.000000e+00> : vector<1x1024xf32>
      %16 = vector.multi_reduction <add>, %15, %cst [1] : vector<1x8x1024xf32> to vector<1x1024xf32>
      %17 = vector.shape_cast %16 : vector<1x1024xf32> to vector<1x1x1024xf32>
      %cst_7 = arith.constant 8.000000e+00 : f32
      %18 = vector.broadcast %cst_7 : f32 to vector<1x1x1024xf32>
      %19 = arith.divf %17, %18 : vector<1x1x1024xf32>
      %c0_8 = arith.constant 0 : index
      %c0_9 = arith.constant 0 : index
      %c0_10 = arith.constant 0 : index
      %20 = vector.load %arg7[%c0_8, %c0_9, %c0_10] : memref<1x2x1024xf32, #tpu.memory_space<vmem>>, vector<1x1x1024xf32>
      tpu.vector_store %arg7[%c0_8, %c0_9, %c0_10], %19 {strides = array<i32>} : memref<1x2x1024xf32, #tpu.memory_space<vmem>>, vector<1x1x1024xf32>,
      %cst_11 = arith.constant dense<0xFF800000> : vector<1x1024xf32>
      %21 = vector.multi_reduction <maximumf>, %15, %cst_11 [1] : vector<1x8x1024xf32> to vector<1x1024xf32>
      %22 = vector.shape_cast %21 : vector<1x1024xf32> to vector<1x1x1024xf32>
      %c0_12 = arith.constant 0 : index
      %c1 = arith.constant 1 : index
      %c0_13 = arith.constant 0 : index
      %23 = vector.load %arg7[%c0_12, %c1, %c0_13] : memref<1x2x1024xf32, #tpu.memory_space<vmem>>, vector<1x1x1024xf32>
      tpu.vector_store %arg7[%c0_12, %c1, %c0_13], %22 {strides = array<i32>} : memref<1x2x1024xf32, #tpu.memory_space<vmem>>, vector<1x1x1024xf32>,
    } else {
    }
    %c1_i32 = arith.constant 1 : i32
    %3 = arith.cmpi eq, %arg1, %c1_i32 : i32
    %4 = arith.extui %3 : i1 to i32
    %c0_i32_1 = arith.constant 0 : i32
    %5 = arith.cmpi ne, %4, %c0_i32_1 : i32
    scf.if %5 {
      %c0 = arith.constant 0 : index
      %c0_5 = arith.constant 0 : index
      %c0_6 = arith.constant 0 : index
      %15 = vector.load %arg3[%c0, %c0_5, %c0_6] : memref<1x16x256xf32, #tpu.memory_space<vmem>>, vector<1x16x256xf32>
      %cst = arith.constant dense<0.000000e+00> : vector<1x256xf32>
      %16 = vector.multi_reduction <add>, %15, %cst [1] : vector<1x16x256xf32> to vector<1x256xf32>
      %17 = vector.shape_cast %16 : vector<1x256xf32> to vector<1x1x256xf32>
      %cst_7 = arith.constant 1.600000e+01 : f32
      %18 = vector.broadcast %cst_7 : f32 to vector<1x1x256xf32>
      %19 = arith.divf %17, %18 : vector<1x1x256xf32>
      %c0_8 = arith.constant 0 : index
      %c0_9 = arith.constant 0 : index
      %c0_10 = arith.constant 0 : index
      %20 = vector.load %arg8[%c0_8, %c0_9, %c0_10] : memref<1x2x256xf32, #tpu.memory_space<vmem>>, vector<1x1x256xf32>
      tpu.vector_store %arg8[%c0_8, %c0_9, %c0_10], %19 {strides = array<i32>} : memref<1x2x256xf32, #tpu.memory_space<vmem>>, vector<1x1x256xf32>,
      %cst_11 = arith.constant dense<0xFF800000> : vector<1x256xf32>
      %21 = vector.multi_reduction <maximumf>, %15, %cst_11 [1] : vector<1x16x256xf32> to vector<1x256xf32>
      %22 = vector.shape_cast %21 : vector<1x256xf32> to vector<1x1x256xf32>
      %c0_12 = arith.constant 0 : index
      %c1 = arith.constant 1 : index
      %c0_13 = arith.constant 0 : index
      %23 = vector.load %arg8[%c0_12, %c1, %c0_13] : memref<1x2x256xf32, #tpu.memory_space<vmem>>, vector<1x1x256xf32>
      tpu.vector_store %arg8[%c0_12, %c1, %c0_13], %22 {strides = array<i32>} : memref<1x2x256xf32, #tpu.memory_space<vmem>>, vector<1x1x256xf32>,
    } else {
    }
    %c2_i32 = arith.constant 2 : i32
    %6 = arith.cmpi eq, %arg1, %c2_i32 : i32
    %7 = arith.extui %6 : i1 to i32
    %c0_i32_2 = arith.constant 0 : i32
    %8 = arith.cmpi ne, %7, %c0_i32_2 : i32
    scf.if %8 {
      %c0 = arith.constant 0 : index
      %c0_5 = arith.constant 0 : index
      %c0_6 = arith.constant 0 : index
      %15 = vector.load %arg4[%c0, %c0_5, %c0_6] : memref<1x24x256xf32, #tpu.memory_space<vmem>>, vector<1x24x256xf32>
      %cst = arith.constant dense<0.000000e+00> : vector<1x256xf32>
      %16 = vector.multi_reduction <add>, %15, %cst [1] : vector<1x24x256xf32> to vector<1x256xf32>
      %17 = vector.shape_cast %16 : vector<1x256xf32> to vector<1x1x256xf32>
      %cst_7 = arith.constant 2.400000e+01 : f32
      %18 = vector.broadcast %cst_7 : f32 to vector<1x1x256xf32>
      %19 = arith.divf %17, %18 : vector<1x1x256xf32>
      %c0_8 = arith.constant 0 : index
      %c0_9 = arith.constant 0 : index
      %c0_10 = arith.constant 0 : index
      %20 = vector.load %arg9[%c0_8, %c0_9, %c0_10] : memref<1x2x256xf32, #tpu.memory_space<vmem>>, vector<1x1x256xf32>
      tpu.vector_store %arg9[%c0_8, %c0_9, %c0_10], %19 {strides = array<i32>} : memref<1x2x256xf32, #tpu.memory_space<vmem>>, vector<1x1x256xf32>,
      %cst_11 = arith.constant dense<0xFF800000> : vector<1x256xf32>
      %21 = vector.multi_reduction <maximumf>, %15, %cst_11 [1] : vector<1x24x256xf32> to vector<1x256xf32>
      %22 = vector.shape_cast %21 : vector<1x256xf32> to vector<1x1x256xf32>
      %c0_12 = arith.constant 0 : index
      %c1 = arith.constant 1 : index
      %c0_13 = arith.constant 0 : index
      %23 = vector.load %arg9[%c0_12, %c1, %c0_13] : memref<1x2x256xf32, #tpu.memory_space<vmem>>, vector<1x1x256xf32>
      tpu.vector_store %arg9[%c0_12, %c1, %c0_13], %22 {strides = array<i32>} : memref<1x2x256xf32, #tpu.memory_space<vmem>>, vector<1x1x256xf32>,
    } else {
    }
    %c3_i32 = arith.constant 3 : i32
    %9 = arith.cmpi eq, %arg1, %c3_i32 : i32
    %10 = arith.extui %9 : i1 to i32
    %c0_i32_3 = arith.constant 0 : i32
    %11 = arith.cmpi ne, %10, %c0_i32_3 : i32
    scf.if %11 {
      %c0 = arith.constant 0 : index
      %c0_5 = arith.constant 0 : index
      %c0_6 = arith.constant 0 : index
      %15 = vector.load %arg5[%c0, %c0_5, %c0_6] : memref<1x32x64xf32, #tpu.memory_space<vmem>>, vector<1x32x64xf32>
      %cst = arith.constant dense<0.000000e+00> : vector<1x64xf32>
      %16 = vector.multi_reduction <add>, %15, %cst [1] : vector<1x32x64xf32> to vector<1x64xf32>
      %17 = vector.shape_cast %16 : vector<1x64xf32> to vector<1x1x64xf32>
      %cst_7 = arith.constant 3.200000e+01 : f32
      %18 = vector.broadcast %cst_7 : f32 to vector<1x1x64xf32>
      %19 = arith.divf %17, %18 : vector<1x1x64xf32>
      %c0_8 = arith.constant 0 : index
      %c0_9 = arith.constant 0 : index
      %c0_10 = arith.constant 0 : index
      %20 = vector.load %arg10[%c0_8, %c0_9, %c0_10] : memref<1x2x64xf32, #tpu.memory_space<vmem>>, vector<1x1x64xf32>
      tpu.vector_store %arg10[%c0_8, %c0_9, %c0_10], %19 {strides = array<i32>} : memref<1x2x64xf32, #tpu.memory_space<vmem>>, vector<1x1x64xf32>,
      %cst_11 = arith.constant dense<0xFF800000> : vector<1x64xf32>
      %21 = vector.multi_reduction <maximumf>, %15, %cst_11 [1] : vector<1x32x64xf32> to vector<1x64xf32>
      %22 = vector.shape_cast %21 : vector<1x64xf32> to vector<1x1x64xf32>
      %c0_12 = arith.constant 0 : index
      %c1 = arith.constant 1 : index
      %c0_13 = arith.constant 0 : index
      %23 = vector.load %arg10[%c0_12, %c1, %c0_13] : memref<1x2x64xf32, #tpu.memory_space<vmem>>, vector<1x1x64xf32>
      tpu.vector_store %arg10[%c0_12, %c1, %c0_13], %22 {strides = array<i32>} : memref<1x2x64xf32, #tpu.memory_space<vmem>>, vector<1x1x64xf32>,
    } else {
    }
    %c4_i32 = arith.constant 4 : i32
    %12 = arith.cmpi eq, %arg1, %c4_i32 : i32
    %13 = arith.extui %12 : i1 to i32
    %c0_i32_4 = arith.constant 0 : i32
    %14 = arith.cmpi ne, %13, %c0_i32_4 : i32
    scf.if %14 {
      %c0 = arith.constant 0 : index
      %c0_5 = arith.constant 0 : index
      %c0_6 = arith.constant 0 : index
      %15 = vector.load %arg6[%c0, %c0_5, %c0_6] : memref<1x48x64xf32, #tpu.memory_space<vmem>>, vector<1x48x64xf32>
      %cst = arith.constant dense<0.000000e+00> : vector<1x64xf32>
      %16 = vector.multi_reduction <add>, %15, %cst [1] : vector<1x48x64xf32> to vector<1x64xf32>
      %17 = vector.shape_cast %16 : vector<1x64xf32> to vector<1x1x64xf32>
      %cst_7 = arith.constant 4.800000e+01 : f32
      %18 = vector.broadcast %cst_7 : f32 to vector<1x1x64xf32>
      %19 = arith.divf %17, %18 : vector<1x1x64xf32>
      %c0_8 = arith.constant 0 : index
      %c0_9 = arith.constant 0 : index
      %c0_10 = arith.constant 0 : index
      %20 = vector.load %arg11[%c0_8, %c0_9, %c0_10] : memref<1x2x64xf32, #tpu.memory_space<vmem>>, vector<1x1x64xf32>
      tpu.vector_store %arg11[%c0_8, %c0_9, %c0_10], %19 {strides = array<i32>} : memref<1x2x64xf32, #tpu.memory_space<vmem>>, vector<1x1x64xf32>,
      %cst_11 = arith.constant dense<0xFF800000> : vector<1x64xf32>
      %21 = vector.multi_reduction <maximumf>, %15, %cst_11 [1] : vector<1x48x64xf32> to vector<1x64xf32>
      %22 = vector.shape_cast %21 : vector<1x64xf32> to vector<1x1x64xf32>
      %c0_12 = arith.constant 0 : index
      %c1 = arith.constant 1 : index
      %c0_13 = arith.constant 0 : index
      %23 = vector.load %arg11[%c0_12, %c1, %c0_13] : memref<1x2x64xf32, #tpu.memory_space<vmem>>, vector<1x1x64xf32>
      tpu.vector_store %arg11[%c0_12, %c1, %c0_13], %22 {strides = array<i32>} : memref<1x2x64xf32, #tpu.memory_space<vmem>>, vector<1x1x64xf32>,
    } else {
    }
    return
  }
  func.func @transform_0(%arg0: i32, %arg1: i32) -> (i32, i32, i32) {
    %c0_i32 = arith.constant 0 : i32
    %c0_i32_0 = arith.constant 0 : i32
    %c0_i32_1 = arith.constant 0 : i32
    return %arg0, %c0_i32, %c0_i32_0 : i32, i32, i32
  }
  func.func @transform_1(%arg0: i32, %arg1: i32) -> (i32, i32, i32) {
    %c0_i32 = arith.constant 0 : i32
    %c0_i32_0 = arith.constant 0 : i32
    %c0_i32_1 = arith.constant 0 : i32
    return %arg0, %c0_i32, %c0_i32_0 : i32, i32, i32
  }
  func.func @transform_2(%arg0: i32, %arg1: i32) -> (i32, i32, i32) {
    %c0_i32 = arith.constant 0 : i32
    %c0_i32_0 = arith.constant 0 : i32
    %c0_i32_1 = arith.constant 0 : i32
    return %arg0, %c0_i32, %c0_i32_0 : i32, i32, i32
  }
  func.func @transform_3(%arg0: i32, %arg1: i32) -> (i32, i32, i32) {
    %c0_i32 = arith.constant 0 : i32
    %c0_i32_0 = arith.constant 0 : i32
    %c0_i32_1 = arith.constant 0 : i32
    return %arg0, %c0_i32, %c0_i32_0 : i32, i32, i32
  }
  func.func @transform_4(%arg0: i32, %arg1: i32) -> (i32, i32, i32) {
    %c0_i32 = arith.constant 0 : i32
    %c0_i32_0 = arith.constant 0 : i32
    %c0_i32_1 = arith.constant 0 : i32
    return %arg0, %c0_i32, %c0_i32_0 : i32, i32, i32
  }
  func.func @transform_5(%arg0: i32, %arg1: i32) -> (i32, i32, i32) {
    %c0_i32 = arith.constant 0 : i32
    %c0_i32_0 = arith.constant 0 : i32
    %c0_i32_1 = arith.constant 0 : i32
    return %arg0, %c0_i32, %c0_i32_0 : i32, i32, i32
  }
  func.func @transform_6(%arg0: i32, %arg1: i32) -> (i32, i32, i32) {
    %c0_i32 = arith.constant 0 : i32
    %c0_i32_0 = arith.constant 0 : i32
    %c0_i32_1 = arith.constant 0 : i32
    return %arg0, %c0_i32, %c0_i32_0 : i32, i32, i32
  }
  func.func @transform_7(%arg0: i32, %arg1: i32) -> (i32, i32, i32) {
    %c0_i32 = arith.constant 0 : i32
    %c0_i32_0 = arith.constant 0 : i32
    %c0_i32_1 = arith.constant 0 : i32
    return %arg0, %c0_i32, %c0_i32_0 : i32, i32, i32
  }
  func.func @transform_8(%arg0: i32, %arg1: i32) -> (i32, i32, i32) {
    %c0_i32 = arith.constant 0 : i32
    %c0_i32_0 = arith.constant 0 : i32
    %c0_i32_1 = arith.constant 0 : i32
    return %arg0, %c0_i32, %c0_i32_0 : i32, i32, i32
  }
  func.func @transform_9(%arg0: i32, %arg1: i32) -> (i32, i32, i32) {
    %c0_i32 = arith.constant 0 : i32
    %c0_i32_0 = arith.constant 0 : i32
    %c0_i32_1 = arith.constant 0 : i32
    return %arg0, %c0_i32, %c0_i32_0 : i32, i32, i32
  }
}

</mosaic_0001>

<bundles_post_ra>
// kernel: tpu_custom_call.1
= control target key start
LH: loop header
LB: loop body
LE: loop exit
PB: predicated region body
PF: predicated region fallthrough
CT: control target
= control target key end

     0   :  { %s2532_s0 = inlined_call_operand.hbm [shape: f32[2,8,1024], index: 0, kind: input, shape index: {}]   ;;  %s2533_s1 = inlined_call_operand.hbm [shape: f32[2,16,256], index: 1, kind: input, shape index: {}]   ;;  %s2534_s2 = inlined_call_operand.hbm [shape: f32[2,24,256], index: 2, kind: input, shape index: {}]   ;;  %s2535_s3 = inlined_call_operand.hbm [shape: f32[2,32,64], index: 3, kind: input, shape index: {}]   ;;  %s2536_s4 = inlined_call_operand.hbm [shape: f32[2,48,64], index: 4, kind: input, shape index: {}]   ;;  %s2537_s5 = inlined_call_operand.hbm [shape: f32[2,2,1024], index: 5, kind: output, shape index: {0}]   ;;  %s2538_s6 = inlined_call_operand.hbm [shape: f32[2,2,256], index: 6, kind: output, shape index: {1}]   ;;  %s2539_s7 = inlined_call_operand.hbm [shape: f32[2,2,256], index: 7, kind: output, shape index: {2}]   ;;  %s2540_s8 = inlined_call_operand.hbm [shape: f32[2,2,64], index: 8, kind: output, shape index: {3}]   ;;  %s2541_s9 = inlined_call_operand.hbm [shape: f32[2,2,64], index: 9, kind: output, shape index: {4}]  }
   0x1   :  { %2563 = sst [smem:[#allocation33_spill]] %s2533_s1 }
   0x2   :  { %2564 = sst [smem:[#allocation34_spill]] %s2535_s3 }
   0x3   :  { %2565 = sst [smem:[#allocation35_spill]] %s2537_s5 }
   0x4   :  { %2566 = sst [smem:[#allocation36_spill]] %s2538_s6 }
   0x5   :  { %2567 = sst [smem:[#allocation37_spill]] %s2539_s7 }
   0x6   :  { %2568 = sst [smem:[#allocation38_spill]] %s2540_s8 }
   0x7   :  { %2569 = sst [smem:[#allocation39_spill]] %s2541_s9 }
   0x8   :  { %15 = vsyncpa [#allocation3], 0 }
   0x9   :  { %17 = vsyncpa [#allocation3 + $0x1], 0 }
   0xa   :  { %18 = vsyncpa [#allocation6], 0 }
   0xb   :  { %20 = vsyncpa [#allocation6 + $0x1], 0 }
   0xc   :  { %21 = vsyncpa [#allocation9], 0 }
   0xd   :  { %23 = vsyncpa [#allocation9 + $0x1], 0 }
   0xe   :  { %24 = vsyncpa [#allocation4], 0 }
   0xf   :  { %26 = vsyncpa [#allocation4 + $0x1], 0 }
  0x10   :  { %27 = vsyncpa [#allocation13], 0 }
  0x11   :  { %29 = vsyncpa [#allocation13 + $0x1], 0 }
  0x12   :  { %30 = vsyncpa [#allocation16], 0 }
  0x13   :  { %32 = vsyncpa [#allocation16 + $0x1], 0  ;;  %s2032_s30 = smov 0   ;;  %s2034_s10 = smov 0  }
  0x14   :  { %s2036_s11 = smov 0   ;;  %s2038_s12 = smov 0  }
  0x15   :  { %s2040_s13 = smov 0   ;;  %s2042_s14 = smov 0  }
  0x16   :  { %s2044_s15 = smov 0   ;;  %s2046_s16 = smov 0  }
  0x17 LB: > { %2570 = sst [smem:[#allocation24_spill]] %s1935_s30  ;;  %s2073_s17 = sadd.s32 4294967295, %s1963_s16   ;;  %s1963_s16 = sphi %s2046_s16, %s38_s16   ;;  %s1959_s15 = sphi %s2044_s15, %s2613_s15   ;;  %s1955_s14 = sphi %s2042_s14, %s2608_s14   ;;  %s1951_s13 = sphi %s2040_s13, %s2612_s13   ;;  %s1947_s12 = sphi %s2038_s12, %s2607_s12   ;;  %s1943_s11 = sphi %s2036_s11, %s2606_s11   ;;  %s1939_s10 = sphi %s2034_s10, %s2611_s10   ;;  %s1935_s30 = sphi %s2032_s30, %s2610_s30  }
  0x18   : > { %2571 = sst [smem:[#allocation25_spill]] %s1943_s11  ;;  %s2542_s18 = sadd.s32 4294967294, %s1963_s16  }
  0x19   : > { %2572 = sst [smem:[#allocation26_spill]] %s1955_s14  ;;  %s47_s19 = sadd.s32 1, %s1955_s14 }
  0x1a   : > { %2573 = sst [smem:[#allocation27_spill]] %s1963_s16  ;;  %s50_s20 = sadd.s32 1, %s1959_s15 }
  0x1b   : > { %p48_p0 = scmp.ge.s32.totalorder %s47_s19, 5  ;;  %s57_s21 = sadd.s32 1, %s1943_s11 }
  0x1c   : > { %p64_p1 = scmp.ne.s32.totalorder %s1943_s11, %s1939_s10  ;;  %p65_p2 = scmp.eq.s32.totalorder %s1963_s16, 0 }
  0x1d   : > { %s2615_s19 = smov (%p48_p0, %s47_s19), 0  ;;  %s2617_s20 = smov (!%p48_p0, %s50_s20), %s1959_s15 }
  0x1e   : > { %2574 = sst [smem:[#allocation28_spill]] %s2615_s19  ;;  %p2085_p3 = por %p65_p2, %p64_p1 }
  0x1f   : > { %p70_p4 = scmp.ne.s32.totalorder %s1939_s10, %s1935_s30  ;;  %p52_p5 = scmp.ge.s32.totalorder %s2617_s20, 2 }
  0x20   : > { %p71_p6 = scmp.eq.s32.totalorder %s2073_s17, 0  ;;  %p198_p7 = scmp.eq.s32.totalorder %s2073_s17, 9 }
  0x21   : > { %p204_p8 = scmp.eq.s32.totalorder %s2542_s18, 9  ;;  %s2619_s20 = smov (%p52_p5, %s2617_s20), 0 }
  0x22   : > { %2576 = sst [smem:[#allocation29_spill]] %s2619_s20  ;;  %p2097_p9 = por %p71_p6, %p70_p4 }
  0x23   : > { %p2101_p10 = por %p198_p7, %p64_p1  ;;  %s54_s25 = ssub.s32 %s1959_s15, %s2619_s20 }
  0x24   : > { %p2107_p11 = por %p204_p8, %p70_p4  ;;  %p55_p12 = scmp.eq.s32.totalorder %s54_s25, 0 }
  0x25   : > { %s2578_s24 = scalar_select %p2101_p10, 1, 0 }
  0x26   : > { %s2580_s26 = scalar_select %p2107_p11, 1, 0 }
  0x27   : > { %2579 = sst [smem:[#allocation30_spill]] %s2578_s24  ;;  %p1534_p13 = scmp.lt.s32.totalorder %s1963_s16, 10 }
  0x28   : > { %2581 = sst [smem:[#allocation31_spill]] %s2580_s26  ;;  %s2113_s27 = sand.u32 1, %s1943_s11  }
  0x29   : > { %s2116_s28 = scalar_select %p55_p12, %s1943_s11, %s57_s21  }
  0x2a   : > { %p2120_p0 = pnand %p1534_p13, %p2085_p3  ;;  %s2549_s18 = sand.u32 1, %s1963_s16  }
  0x2b   : > { %2582 = sst [smem:[#allocation32_spill]] %s2116_s28  ;;  %s1431_s19 = sshll.u32 %s2113_s27, 5 }
  0x2c   : > { %s1472_s20 = sshll.u32 %s1959_s15, 9  ;;  %s351_s14 = scalar_lea.vmem [#allocation5], %s1431_s19 }
  0x2d   : > { %s358_s30 = sshll.u32 %s351_s14, 4  ;;  %s2584_s1 = sld [smem:[#allocation33_spill]]  ;;  %s359_s30 = int_to_ptr.vmem [resolvable:$true] %s358_s30 }
  0x2e   : > { %s2132_s7 = scalar_lea.sflag [#allocation6], %s2549_s18  ;;  %p2136_p1 = pneg %p2120_p0 }
  0x2f   : > { %s1620_s22 = scalar_lea.vmem %s359_s30, 512  ;;  %s1965_s14 = smov [#allocation5]  }
  0x30   : > { %p1621_p2 = scmp.ne.s32.totalorder %s359_s30, %s1620_s22  ;;  %s1625_s28 = sshll.u32 %s1965_s14, 4  ;;  %s1626_s28 = int_to_ptr.vmem [resolvable:$false] %s1625_s28 }
  0x31   : > { %s1627_s9 = scalar_lea.vmem %s1626_s28, 1024  ;;  %p1628_p5 = scmp.lt.s32.totalorder %s359_s30, %s1626_s28 }
  0x32   : > { %p1623_p3 = pnand %p1621_p2, %p2136_p1  ;;  %p1629_p6 = scmp.lt.s32.totalorder %s1627_s9, %s1620_s22 }
  0x33   : > { %s357_s25 = scalar_lea.hbm %s2584_s1, %s1472_s20 }
  0x34   : > { %p1624_p4 = pneg %p1623_p3  ;;  %p1630_p7 = por %p1629_p6, %p1628_p5 }
  0x36   : > { %p1631_p8 = pnand %p1630_p7, %p1624_p4 }
  0x38   : > { %1634 = shalt.err (!%p1631_p8)
}
  0x39   : > { %s2554_s26 = smov 256   ;;  %s2555_s18 = smov 16  }
  0x3a   : > { %1508 = dma.hbm_to_vmem [thread:$0]  (!%p2120_p0), %s357_s25, 512, %s359_s30, %s2132_s7, %s2554_s26, %s2554_s26, %s2555_s18  }
  0x3b   : > { %p1439_p12 = scmp.ge.s32.totalorder %s1963_s16, 1  ;;  %p429_p13 = scmp.lt.s32.totalorder %s1963_s16, 11 }
  0x3c   : > { %s2587_s3 = sld [smem:[#allocation34_spill]]  ;;  %s393_s1 = scalar_lea.vmem [#allocation8], %s1431_s19 }
  0x3d   : > { %p2150_p2 = pnand %p1439_p12, %p429_p13  ;;  %s400_s11 = sshll.u32 %s393_s1, 4  ;;  %s401_s11 = int_to_ptr.vmem [resolvable:$true] %s400_s11 }
  0x3e   : > { %s2588_s5 = sand.u32 1, %s1963_s16   ;;  %s1648_s6 = scalar_lea.vmem %s401_s11, 512 }
  0x3f   : > { %s2159_s8 = scalar_lea.sflag [#allocation9], %s2588_s5  ;;  %p1649_p3 = scmp.ne.s32.totalorder %s401_s11, %s1648_s6 }
  0x40   : > { %s1968_s30 = smov [#allocation8]  }
  0x41   : > { %p1651_p4 = pnand %p1649_p3, %p2136_p1  ;;  %s1653_s25 = sshll.u32 %s1968_s30, 4  ;;  %s1654_s25 = int_to_ptr.vmem [resolvable:$false] %s1653_s25 }
  0x42   : > { %s399_s9 = scalar_lea.hbm %s2587_s3, %s1472_s20  ;;  %s1655_s26 = scalar_lea.vmem %s1654_s25, 1024 }
  0x43   : > { %p1652_p5 = pneg %p1651_p4  ;;  %p1656_p6 = scmp.lt.s32.totalorder %s401_s11, %s1654_s25 }
  0x44   : > { %p1657_p7 = scmp.lt.s32.totalorder %s1655_s26, %s1648_s6 }
  0x46   : > { %p1658_p8 = por %p1657_p7, %p1656_p6 }
  0x48   : > { %p1659_p12 = pnand %p1658_p8, %p1652_p5 }
  0x4a   : > { %1662 = shalt.err (!%p1659_p12)
}
  0x4b   : > { %s2560_s19 = smov 128   ;;  %s1970_s1 = smov 8  }
  0x4c   : > { %1514 = dma.hbm_to_vmem [thread:$0]  (!%p2120_p0), %s399_s9, 512, %s401_s11, %s2159_s8, %s2560_s19, %s2560_s19, %s1970_s1  }
  0x4d   : > { %s1428_s5 = sshll.u32 %s2113_s27, 6  ;;  %s1471_s20 = sshll.u32 %s1959_s15, 10 }
  0x4e   : > { %s338_s22 = scalar_lea.hbm %s2532_s0, %s1471_s20  ;;  %s332_s14 = scalar_lea.vmem [#allocation2], %s1428_s5 }
  0x4f   : > { %s340_s30 = sshll.u32 %s332_s14, 4  ;;  %s1477_s25 = smul.u32 48, %s2113_s27  ;;  %s341_s30 = int_to_ptr.vmem [resolvable:$true] %s340_s30 }
  0x50   : > { %s329_s18 = scalar_lea.sflag [#allocation3], %s2113_s27  ;;  %s1676_s3 = scalar_lea.vmem %s341_s30, 1024 }
  0x51   : > { %p1677_p13 = scmp.ne.s32.totalorder %s341_s30, %s1676_s3  ;;  %s1971_s16 = smov [#allocation2]  }
  0x52   : > { %s1681_s24 = sshll.u32 %s1971_s16, 4  ;;  %s1682_s24 = int_to_ptr.vmem [resolvable:$false] %s1681_s24 }
  0x53   : > { %p1679_p3 = pnand %p1677_p13, %p2136_p1  ;;  %s1683_s11 = scalar_lea.vmem %s1682_s24, 2048 }
  0x54   : > { %p1684_p5 = scmp.lt.s32.totalorder %s341_s30, %s1682_s24  ;;  %p1685_p6 = scmp.lt.s32.totalorder %s1683_s11, %s1676_s3 }
  0x55   : > { %p1680_p4 = pneg %p1679_p3 }
  0x56   : > { %p1686_p7 = por %p1685_p6, %p1684_p5 }
  0x58   : > { %p1687_p8 = pnand %p1686_p7, %p1680_p4 }
  0x5a   : > { %1690 = shalt.err (!%p1687_p8)
}
  0x5b   : > { %1505 = dma.hbm_to_vmem [thread:$0]  (!%p2120_p0), %s338_s22, 1024, %s341_s30, %s329_s18  }
  0x5c   : > { %s1478_s9 = smul.u32 768, %s1959_s15  ;;  %s372_s5 = scalar_lea.vmem [#allocation7], %s1477_s25 }
  0x5d   : > { %s379_s20 = sshll.u32 %s372_s5, 4  ;;  %s1972_s3 = smov [#allocation7]   ;;  %s380_s20 = int_to_ptr.vmem [resolvable:$true] %s379_s20 }
  0x5e   : > { %s378_s16 = scalar_lea.hbm %s2534_s2, %s1478_s9  ;;  %s1704_s24 = scalar_lea.vmem %s380_s20, 768 }
  0x5f   : > { %p1705_p12 = scmp.ne.s32.totalorder %s380_s20, %s1704_s24  ;;  %s1709_s14 = sshll.u32 %s1972_s3, 4  ;;  %s1710_s14 = int_to_ptr.vmem [resolvable:$false] %s1709_s14 }
  0x60   : > { %s1711_s11 = scalar_lea.vmem %s1710_s14, 1536  ;;  %p1712_p4 = scmp.lt.s32.totalorder %s380_s20, %s1710_s14 }
  0x61   : > { %p1707_p13 = pnand %p1705_p12, %p2136_p1  ;;  %p1713_p5 = scmp.lt.s32.totalorder %s1711_s11, %s1704_s24 }
  0x63   : > { %p1708_p3 = pneg %p1707_p13  ;;  %p1714_p6 = por %p1713_p5, %p1712_p4 }
  0x65   : > { %p1715_p7 = pnand %p1714_p6, %p1708_p3 }
  0x67   : > { %1718 = shalt.err (!%p1715_p7)
}
  0x68   : > { %s2589_s18 = smov 16   ;;  %s2590_s22 = smov 256  }
  0x69   : > { %1511 = dma.hbm_to_vmem [thread:$0]  (!%p2120_p0), %s378_s16, 768, %s380_s20, %s2132_s7, %s2590_s22, %s2590_s22, %s2589_s18  }
  0x6a   : > { %s420_s6 = scalar_lea.hbm %s2536_s4, %s1478_s9  ;;  %s414_s26 = scalar_lea.vmem [#allocation10], %s1477_s25 }
  0x6b   : > { %s421_s3 = sshll.u32 %s414_s26, 4  ;;  %s1973_s14 = smov [#allocation10]   ;;  %s422_s3 = int_to_ptr.vmem [resolvable:$true] %s421_s3 }
  0x6c   : > { %s1732_s24 = scalar_lea.vmem %s422_s3, 768  ;;  %s1737_s11 = sshll.u32 %s1973_s14, 4  ;;  %s1738_s11 = int_to_ptr.vmem [resolvable:$false] %s1737_s11 }
  0x6d   : > { %p1733_p8 = scmp.ne.s32.totalorder %s422_s3, %s1732_s24  ;;  %s1739_s19 = scalar_lea.vmem %s1738_s11, 1536 }
  0x6e   : > { %p1740_p3 = scmp.lt.s32.totalorder %s422_s3, %s1738_s11  ;;  %p1741_p4 = scmp.lt.s32.totalorder %s1739_s19, %s1732_s24 }
  0x6f   : > { %p1735_p12 = pnand %p1733_p8, %p2136_p1 }
  0x70   : > { %p1742_p5 = por %p1741_p4, %p1740_p3 }
  0x71   : > { %p1736_p13 = pneg %p1735_p12 }
  0x73   : > { %p1743_p6 = pnand %p1742_p5, %p1736_p13 }
  0x75   : > { %1746 = shalt.err (!%p1743_p6)
}
  0x76   : > { %s2591_s7 = smov 128   ;;  %433 = sbr.rel (%p2150_p2) target bundleno = 437 (0x1b5), region = 40 }
  0x77   : > { %1517 = dma.hbm_to_vmem [thread:$0]  (!%p2120_p0), %s420_s6, 768, %s422_s3, %s2159_s8, %s2591_s7, %s2591_s7, %s1970_s1  }
  0x78   : > { %s2210_s27 = sand.u32 (!%p2150_p2), 1, %s1939_s10  }
  0x79   : > { %s1440_s21 = sshll.u32 (!%p2150_p2), %s2210_s27, 6  ;;  %s436_s19 = scalar_lea.sflag (!%p2150_p2), [#allocation3], %s2210_s27 }
  0x7a   : > { %s2214_s25 = scalar_lea.vmem (!%p2150_p2), [#allocation2], %s1440_s21 }
  0x7b   : > { %1910 = dma.done.wait (%p2097_p9), %s436_s19, 1024  }
  0x7c   : > { %1912 = vsyncadd (%p2097_p9), %s436_s19, 4294966272  ;;  %s2221_s8 = sand.u32 1, %s2073_s17   ;;  %s1441_s29 = sshll.u32 %s2210_s27, 5 }
  0x7d   : > { %s445_s28 = scalar_lea.sflag [#allocation6], %s2221_s8  ;;  %s2225_s1 = scalar_lea.vmem [#allocation5], %s1441_s29 }
  0x7e   : > { %1914 = dma.done.wait (%p2097_p9), %s445_s28, 1280  }
  0x7f   : > { %1916 = vsyncadd (%p2097_p9), %s445_s28, 4294966016  ;;  %s1481_s9 = smul.u32 48, %s2210_s27  ;;  %s463_s16 = scalar_lea.sflag [#allocation9], %s2221_s8 }
  0x80   : > { %s2235_s18 = scalar_lea.vmem [#allocation8], %s1441_s29 }
  0x81   : > { %s2232_s20 = scalar_lea.vmem [#allocation7], %s1481_s9 }
  0x82   : > { %1918 = dma.done.wait (%p2097_p9), %s463_s16, 1280  }
  0x83   : > { %1920 = vsyncadd (%p2097_p9), %s463_s16, 4294966016  ;;  %s1443_s17 = sshll.u32 %s2210_s27, 4  ;;  %s1444_s22 = sshll.u32 %s2210_s27, 2 }
  0x84   : > { %s1446_s30 = sshll.u32 %s2210_s27, 1  ;;  %s2244_s5 = scalar_lea.vmem [#allocation10], %s1481_s9 }
  0x85   : > { %s2246_s6 = scalar_lea.vmem [#allocation11], %s1443_s17  ;;  %s2248_s26 = scalar_lea.vmem [#allocation12], %s1444_s22 }
  0x86   : > { %s2250_s3 = scalar_lea.vmem [#allocation14], %s1444_s22  ;;  %s2252_s24 = scalar_lea.vmem [#allocation15], %s1446_s30 }
  0x87   : > { %s2254_s14 = scalar_lea.vmem [#allocation17], %s1446_s30  ;;  %p1448_p9 = scmp.ne.s32.totalorder %s1947_s12, 0 }
  0x89   : > { %553 = sbr.rel (%p1448_p9) target bundleno = 188 (0xbc), region = 64 }
  0x8e   : > { %v2258_v0 = vld [vmem:[%s2214_s25] sm:$0xff]  ;;  %v2261_v1 = vld [vmem:[%s2214_s25 + $0x8] sm:$0xff]  ;;  %v2264_v2 = vld [vmem:[%s2214_s25 + $0x10] sm:$0xff]  ;;  %v634_v3 = vlaneseq  ;;  %v1974_v10 = vmov 1966171168  }
  0x8f   : > { %v2267_v4 = vld [vmem:[%s2214_s25 + $0x18] sm:$0xff]  ;;  %v2270_v5 = vld [vmem:[%s2214_s25 + $0x20] sm:$0xff]  ;;  %v2273_v6 = vld [vmem:[%s2214_s25 + $0x28] sm:$0xff]  ;;  %v562_v7 = vrot.slane %v2258_v0, 4  ;;  %v568_v8 = vrot.slane %v2261_v1, 4  ;;  %v574_v9 = vrot.slane %v2264_v2, 4  ;;  %v2278_v11 = vunpack.c.l.s4 %v1974_v10 }
  0x90   : > { %v2281_v12 = vld [vmem:[%s2214_s25 + $0x30] sm:$0xff]  ;;  %v2284_v13 = vld [vmem:[%s2214_s25 + $0x38] sm:$0xff]  ;;  %v580_v14 = vrot.slane %v2267_v4, 4  ;;  %v586_v15 = vrot.slane %v2270_v5, 4  ;;  %v592_v16 = vrot.slane %v2273_v6, 4  ;;  %v635_v17 = vshrl.u32 %v634_v3, 7 }
  0x91   : > { %v563_v18 = vadd.f32 %v562_v7, %v2258_v0  ;;  %v569_v19 = vadd.f32 %v568_v8, %v2261_v1  ;;  %v575_v20 = vadd.f32 %v574_v9, %v2264_v2  ;;  %v598_v21 = vrot.slane %v2281_v12, 4 }
  0x92   : > { %v581_v22 = vadd.f32 %v580_v14, %v2267_v4  ;;  %v587_v23 = vadd.f32 %v586_v15, %v2270_v5  ;;  %v593_v24 = vadd.f32 %v592_v16, %v2273_v6  ;;  %v604_v25 = vrot.slane %v2284_v13, 4 }
  0x93   : > { %v564_v26 = vrot.slane %v563_v18, 2  ;;  %v570_v27 = vrot.slane %v569_v19, 2  ;;  %v576_v28 = vrot.slane %v575_v20, 2  ;;  %v599_v29 = vadd.f32 %v598_v21, %v2281_v12 }
  0x94   : > { %v582_v30 = vrot.slane %v581_v22, 2  ;;  %v588_v31 = vrot.slane %v587_v23, 2  ;;  %v594_v32 = vrot.slane %v593_v24, 2  ;;  %v605_v33 = vadd.f32 %v604_v25, %v2284_v13 }
  0x95   : > { %v565_v34 = vadd.f32 %v564_v26, %v563_v18  ;;  %v571_v35 = vadd.f32 %v570_v27, %v569_v19  ;;  %v577_v36 = vadd.f32 %v576_v28, %v575_v20  ;;  %v600_v37 = vrot.slane %v599_v29, 2 }
  0x96   : > { %v583_v38 = vadd.f32 %v582_v30, %v581_v22  ;;  %v589_v39 = vadd.f32 %v588_v31, %v587_v23  ;;  %v595_v40 = vadd.f32 %v594_v32, %v593_v24  ;;  %v606_v41 = vrot.slane %v605_v33, 2 }
  0x97   : > { %v566_v42 = vrot.slane %v565_v34, 1  ;;  %v572_v43 = vrot.slane %v571_v35, 1  ;;  %v578_v44 = vrot.slane %v577_v36, 1  ;;  %v601_v45 = vadd.f32 %v600_v37, %v599_v29 }
  0x98   : > { %v584_v46 = vrot.slane %v583_v38, 1  ;;  %v590_v47 = vrot.slane %v589_v39, 1  ;;  %v596_v48 = vrot.slane %v595_v40, 1  ;;  %v607_v49 = vadd.f32 %v606_v41, %v605_v33 }
  0x99   : > { %v567_v50 = vadd.f32 %v566_v42, %v565_v34  ;;  %v573_v51 = vadd.f32 %v572_v43, %v571_v35  ;;  %v579_v52 = vadd.f32 %v578_v44, %v577_v36  ;;  %v602_v53 = vrot.slane %v601_v45, 1 }
  0x9a   : > { %v585_v54 = vadd.f32 %v584_v46, %v583_v38  ;;  %v591_v55 = vadd.f32 %v590_v47, %v589_v39  ;;  %v597_v56 = vadd.f32 %v596_v48, %v595_v40  ;;  %v608_v57 = vrot.slane %v607_v49, 1 }
  0x9b   : > { %v603_v58 = vadd.f32 %v602_v53, %v601_v45  ;;  %v611_v59 = vmul.f32 0.125, %v567_v50  ;;  %v612_v60 = vmul.f32 0.125, %v573_v51  ;;  %v613_v61 = vmul.f32 0.125, %v579_v52 }
  0x9c   : > { %v609_v62 = vadd.f32 %v608_v57, %v607_v49  ;;  %v614_v63 = vmul.f32 0.125, %v585_v54  ;;  %v615_v3 = vmul.f32 0.125, %v591_v55  ;;  %v616_v10 = vmul.f32 0.125, %v597_v56 }
  0x9d   : > { %v617_v18 = vmul.f32 0.125, %v603_v58  ;;  %v627_v19 = vcombine.low %v611_v59, %v612_v60  ;;  %v633_v20 = vunpack.c.0.s8 %v2278_v11  ;;  %v679_v22 = vmax.f32 %v2258_v0, %v562_v7 }
  0x9e   : > { %v618_v23 = vmul.f32 0.125, %v609_v62  ;;  %v628_v24 = vcombine.low %v613_v61, %v614_v63  ;;  %v629_v26 = vcombine.low %v615_v3, %v616_v10  ;;  %v685_v27 = vmax.f32 %v2261_v1, %v568_v8 }
  0x9f   : > { %v636_v28 = vsub.s32 %v633_v20, %v635_v17  ;;  %v680_v29 = vrot.slane %v679_v22, 2  ;;  %v691_v30 = vmax.f32 %v2264_v2, %v574_v9  ;;  %v697_v31 = vmax.f32 %v2267_v4, %v580_v14 }
  0xa0   : > { %v630_v11 = vcombine.low %v617_v18, %v618_v23  ;;  %v686_v32 = vrot.slane %v685_v27, 2  ;;  %v703_v0 = vmax.f32 %v2270_v5, %v586_v15  ;;  %v709_v1 = vmax.f32 %v2273_v6, %v592_v16 }
  0xa1   : > { %v637_v7 = vrot.slane %v627_v19, %v636_v28  ;;  %v644_v8 = vrot.slane %v628_v24, %v636_v28  ;;  %v651_v17 = vrot.slane %v629_v26, %v636_v28  ;;  %v681_v33 = vmax.f32 %v679_v22, %v680_v29 }
  0xa2   : > { %v658_v34 = vrot.slane %v630_v11, %v636_v28  ;;  %v687_v2 = vmax.f32 %v685_v27, %v686_v32  ;;  %v692_v9 = vrot.slane %v691_v30, 2  ;;  %v698_v35 = vrot.slane %v697_v31, 2 }
  0xa3   : > { %v659_v36 = vcombine.low %v637_v7, %v644_v8  ;;  %v682_v4 = vrot.slane %v681_v33, 1  ;;  %v704_v14 = vrot.slane %v703_v0, 2  ;;  %v710_v37 = vrot.slane %v709_v1, 2 }
  0xa4   : > { %v660_v38 = vcombine.low %v651_v17, %v658_v34  ;;  %v688_v39 = vrot.slane %v687_v2, 1  ;;  %v693_v40 = vmax.f32 %v691_v30, %v692_v9  ;;  %v699_v5 = vmax.f32 %v697_v31, %v698_v35 }
  0xa5   : > { %v667_v15 = vrot.slane %v659_v36, %v636_v28  ;;  %v683_v41 = vmax.f32 %v681_v33, %v682_v4  ;;  %v705_v42 = vmax.f32 %v703_v0, %v704_v14  ;;  %v711_v6 = vmax.f32 %v709_v1, %v710_v37 }
  0xa6   : > { %v674_v16 = vrot.slane %v660_v38, %v636_v28  ;;  %v689_v43 = vmax.f32 %v687_v2, %v688_v39  ;;  %v694_v44 = vrot.slane %v693_v40, 1  ;;  %v700_v45 = vrot.slane %v699_v5, 1 }
  0xa7   : > { %v706_v46 = vrot.slane %v705_v42, 1  ;;  %v712_v47 = vrot.slane %v711_v6, 1  ;;  %v715_v48 = vmax.f32 %v2281_v12, %v598_v21  ;;  %v721_v49 = vmax.f32 %v2284_v13, %v604_v25 }
  0xa8   : > { %v675_v50 = vcombine.low %v667_v15, %v674_v16  ;;  %v695_v51 = vmax.f32 %v693_v40, %v694_v44  ;;  %v701_v52 = vmax.f32 %v699_v5, %v700_v45  ;;  %v734_v53 = vcombine.low %v683_v41, %v689_v43 }
  0xa9   : > { %v707_v54 = vmax.f32 %v705_v42, %v706_v46  ;;  %v713_v55 = vmax.f32 %v711_v6, %v712_v47  ;;  %v716_v56 = vrot.slane %v715_v48, 2  ;;  %v722_v57 = vrot.slane %v721_v49, 2 }
  0xaa   : > { %677 = vst [vmem:[%s2246_s6] ss:$2 sm:$0xff] %v675_v50  ;;  %v735_v58 = vcombine.low %v695_v51, %v701_v52  ;;  %v744_v61 = vrot.slane %v734_v53, %v636_v28 }
  0xab   : > { %v717_v59 = vmax.f32 %v715_v48, %v716_v56  ;;  %v723_v60 = vmax.f32 %v721_v49, %v722_v57  ;;  %v736_v21 = vcombine.low %v707_v54, %v713_v55 }
  0xac   : > { %v751_v63 = vrot.slane %v735_v58, %v636_v28 }
  0xad   : > { %v718_v62 = vrot.slane %v717_v59, 1  ;;  %v724_v12 = vrot.slane %v723_v60, 1  ;;  %v758_v10 = vrot.slane %v736_v21, %v636_v28 }
  0xae   : > { %v766_v18 = vcombine.low %v744_v61, %v751_v63 }
  0xaf   : > { %v719_v3 = vmax.f32 %v717_v59, %v718_v62  ;;  %v725_v13 = vmax.f32 %v723_v60, %v724_v12 }
  0xb0   : > { %v774_v22 = vrot.slane %v766_v18, %v636_v28 }
  0xb1   : > { %v737_v25 = vcombine.low %v719_v3, %v725_v13 }
  0xb3   : > { %v765_v19 = vrot.slane %v737_v25, %v636_v28 }
  0xb5   : > { %v767_v20 = vcombine.low %v758_v10, %v765_v19 }
  0xb7   : > { %v781_v23 = vrot.slane %v767_v20, %v636_v28 }
  0xb9   : > { %v782_v24 = vcombine.low %v774_v22, %v781_v23 }
  0xbb   : > { %1449 = vst [vmem:[%s2246_s6 + $0x1] ss:$2 sm:$0xff] %v782_v24 }
  0xbc PF: > { %p1450_p0 = scmp.ne.s32.totalorder %s1947_s12, 1 }
  0xbe   : > { %789 = sbr.rel (%p1450_p0) target bundleno = 220 (0xdc), region = 68 }
  0xc3   : > { %v790_v26 = vld [vmem:[%s2225_s1] sm:$0xff]  ;;  %v791_v27 = vld [vmem:[%s2225_s1 + $0x8] sm:$0xff]  ;;  %v792_v29 = vld [vmem:[%s2225_s1 + $0x10] sm:$0xff]  ;;  %v1975_v2 = vmov 1966171168   ;;  %v817_v35 = vlaneseq }
  0xc4   : > { %v793_v30 = vld [vmem:[%s2225_s1 + $0x18] sm:$0xff]  ;;  %v794_v31 = vadd.f32 %v792_v29, %v790_v26  ;;  %v834_v11 = vmax.f32 %v790_v26, %v792_v29  ;;  %v815_v9 = vunpack.c.l.s4 %v1975_v2 }
  0xc5   : > { %v801_v32 = vadd.f32 %v793_v30, %v791_v27  ;;  %v841_v0 = vmax.f32 %v791_v27, %v793_v30  ;;  %v818_v41 = vshrl.u32 %v817_v35, 7  ;;  %vm831_vm0 = vcmp.lt.s32.totalorder %v817_v35, 256 }
  0xc6   : > { %v795_v1 = vrot.slane %v794_v31, 4  ;;  %v835_v28 = vrot.slane %v834_v11, 4  ;;  %v816_v15 = vunpack.c.0.s8 %v815_v9 }
  0xc7   : > { %v802_v7 = vrot.slane %v801_v32, 4  ;;  %v842_v8 = vrot.slane %v841_v0, 4 }
  0xc8   : > { %v796_v17 = vadd.f32 %v795_v1, %v794_v31  ;;  %v836_v33 = vmax.f32 %v834_v11, %v835_v28  ;;  %v819_v48 = vsub.s32 %v816_v15, %v818_v41 }
  0xc9   : > { %v803_v34 = vadd.f32 %v802_v7, %v801_v32  ;;  %v843_v36 = vmax.f32 %v841_v0, %v842_v8 }
  0xca   : > { %v797_v4 = vrot.slane %v796_v17, 2  ;;  %v837_v14 = vrot.slane %v836_v33, 2 }
  0xcb   : > { %v804_v37 = vrot.slane %v803_v34, 2  ;;  %v844_v38 = vrot.slane %v843_v36, 2 }
  0xcc   : > { %v798_v39 = vadd.f32 %v797_v4, %v796_v17  ;;  %v838_v40 = vmax.f32 %v836_v33, %v837_v14 }
  0xcd   : > { %v805_v5 = vadd.f32 %v804_v37, %v803_v34  ;;  %v845_v42 = vmax.f32 %v843_v36, %v844_v38 }
  0xce   : > { %v799_v6 = vrot.slane %v798_v39, 1  ;;  %v839_v16 = vrot.slane %v838_v40, 1 }
  0xcf   : > { %v806_v43 = vrot.slane %v805_v5, 1  ;;  %v846_v44 = vrot.slane %v845_v42, 1 }
  0xd0   : > { %v800_v45 = vadd.f32 %v799_v6, %v798_v39  ;;  %v840_v46 = vmax.f32 %v838_v40, %v839_v16 }
  0xd1   : > { %v807_v47 = vadd.f32 %v806_v43, %v805_v5  ;;  %v847_v49 = vmax.f32 %v845_v42, %v846_v44 }
  0xd2   : > { %v809_v50 = vmul.f32 0.0625, %v800_v45 }
  0xd3   : > { %v810_v51 = vmul.f32 0.0625, %v807_v47  ;;  %v850_v52 = vcombine.low %v840_v46, %v847_v49 }
  0xd5   : > { %v813_v53 = vcombine.low %v809_v50, %v810_v51  ;;  %v857_v54 = vrot.slane %v850_v52, %v819_v48 }
  0xd7   : > { %v820_v55 = vrot.slane %v813_v53, %v819_v48  ;;  %v864_v56 = vrot.slane %v857_v54, %v819_v48 }
  0xd9   : > { %v827_v57 = vrot.slane %v820_v55, %v819_v48  ;;  %1451 = vst.msk [vmem:[%s2248_s26 + $0x1] ss:$2 sm:$0x3] %vm831_vm0, %v864_v56 }
  0xdb   : > { %833 = vst.msk [vmem:[%s2248_s26] ss:$2 sm:$0x3] %vm831_vm0, %v827_v57 }
  0xdc PF: > { %p1452_p1 = scmp.ne.s32.totalorder %s1947_s12, 2 }
  0xde   : > { %871 = sbr.rel (%p1452_p1) target bundleno = 254 (0xfe), region = 72 }
  0xe3   : > { %v872_v58 = vld [vmem:[%s2232_s20] sm:$0xff]  ;;  %v873_v59 = vld [vmem:[%s2232_s20 + $0x8] sm:$0xff]  ;;  %v874_v60 = vld [vmem:[%s2232_s20 + $0x10] sm:$0xff]  ;;  %v1976_v31 = vmov 1966171168   ;;  %v903_v32 = vlaneseq }
  0xe4   : > { %v875_v61 = vld [vmem:[%s2232_s20 + $0x18] sm:$0xff]  ;;  %v876_v62 = vld [vmem:[%s2232_s20 + $0x20] sm:$0xff]  ;;  %v877_v12 = vld [vmem:[%s2232_s20 + $0x28] sm:$0xff]  ;;  %v878_v21 = vadd.f32 %v874_v60, %v872_v58  ;;  %v901_v11 = vunpack.c.l.s4 %v1976_v31 }
  0xe5   : > { %v886_v63 = vadd.f32 %v875_v61, %v873_v59  ;;  %v920_v3 = vmax.f32 %v872_v58, %v876_v62  ;;  %v928_v25 = vmax.f32 %v873_v59, %v877_v12  ;;  %v904_v9 = vshrl.u32 %v903_v32, 7 }
  0xe6   : > { %v879_v13 = vadd.f32 %v878_v21, %v876_v62  ;;  %v902_v2 = vunpack.c.0.s8 %v901_v11  ;;  %vm917_vm1 = vcmp.lt.s32.totalorder %v903_v32, 256 }
  0xe7   : > { %v887_v10 = vadd.f32 %v886_v63, %v877_v12  ;;  %v921_v18 = vmax.f32 %v920_v3, %v874_v60  ;;  %v929_v20 = vmax.f32 %v928_v25, %v875_v61 }
  0xe8   : > { %v880_v19 = vrot.slane %v879_v13, 4  ;;  %v905_v5 = vsub.s32 %v902_v2, %v904_v9 }
  0xe9   : > { %v888_v22 = vrot.slane %v887_v10, 4  ;;  %v922_v23 = vrot.slane %v921_v18, 4  ;;  %v930_v26 = vrot.slane %v929_v20, 4 }
  0xea   : > { %v881_v24 = vadd.f32 %v880_v19, %v879_v13 }
  0xeb   : > { %v889_v27 = vadd.f32 %v888_v22, %v887_v10  ;;  %v923_v29 = vmax.f32 %v921_v18, %v922_v23  ;;  %v931_v0 = vmax.f32 %v929_v20, %v930_v26 }
  0xec   : > { %v882_v30 = vrot.slane %v881_v24, 2 }
  0xed   : > { %v890_v1 = vrot.slane %v889_v27, 2  ;;  %v924_v28 = vrot.slane %v923_v29, 2  ;;  %v932_v8 = vrot.slane %v931_v0, 2 }
  0xee   : > { %v883_v7 = vadd.f32 %v882_v30, %v881_v24 }
  0xef   : > { %v891_v17 = vadd.f32 %v890_v1, %v889_v27  ;;  %v925_v33 = vmax.f32 %v923_v29, %v924_v28  ;;  %v933_v35 = vmax.f32 %v931_v0, %v932_v8 }
  0xf0   : > { %v884_v34 = vrot.slane %v883_v7, 1 }
  0xf1   : > { %v892_v36 = vrot.slane %v891_v17, 1  ;;  %v926_v4 = vrot.slane %v925_v33, 1  ;;  %v934_v37 = vrot.slane %v933_v35, 1 }
  0xf2   : > { %v885_v14 = vadd.f32 %v884_v34, %v883_v7 }
  0xf3   : > { %v893_v38 = vadd.f32 %v892_v36, %v891_v17  ;;  %v927_v39 = vmax.f32 %v925_v33, %v926_v4  ;;  %v935_v15 = vmax.f32 %v933_v35, %v934_v37 }
  0xf4   : > { %v895_v40 = vmul.f32 0.041666668, %v885_v14 }
  0xf5   : > { %v896_v41 = vmul.f32 0.041666668, %v893_v38  ;;  %v938_v42 = vcombine.low %v927_v39, %v935_v15 }
  0xf7   : > { %v899_v6 = vcombine.low %v895_v40, %v896_v41  ;;  %v945_v16 = vrot.slane %v938_v42, %v905_v5 }
  0xf9   : > { %v906_v43 = vrot.slane %v899_v6, %v905_v5  ;;  %v952_v44 = vrot.slane %v945_v16, %v905_v5 }
  0xfb   : > { %v913_v45 = vrot.slane %v906_v43, %v905_v5  ;;  %1453 = vst.msk [vmem:[%s2250_s3 + $0x1] ss:$2 sm:$0x3] %vm917_vm1, %v952_v44 }
  0xfd   : > { %919 = vst.msk [vmem:[%s2250_s3] ss:$2 sm:$0x3] %vm917_vm1, %v913_v45 }
  0xfe PF: > { %p1454_p2 = scmp.ne.s32.totalorder %s1947_s12, 3 }
 0x100   : > { %959 = sbr.rel (%p1454_p2) target bundleno = 284 (0x11c), region = 76 }
 0x105   : > { %v960_v46 = vld [vmem:[%s2235_s18] sm:$0xff]  ;;  %v961_v47 = vld [vmem:[%s2235_s18 + $0x8] sm:$0xff]  ;;  %v962_v48 = vld [vmem:[%s2235_s18 + $0x10] sm:$0xff]  ;;  %vm964_vm2 = vcmask 523264   ;;  %vm980_vm3 = vcmask 516096  }
 0x106   : > { %v963_v49 = vld [vmem:[%s2235_s18 + $0x18] sm:$0xff]  ;;  %v965_v50 = vsel %vm964_vm2, %v960_v46, 0.0  ;;  %v966_v51 = vsel %vm964_vm2, %v961_v47, 0.0  ;;  %v968_v52 = vsel %vm964_vm2, %v962_v48, 0.0  ;;  %v982_v53 = vsel %vm964_vm2, %v960_v46, -inf }
 0x107   : > { %v967_v54 = vadd.f32 %v966_v51, %v965_v50  ;;  %v983_v55 = vsel %vm964_vm2, %v961_v47, -inf  ;;  %v984_v56 = vsel %vm964_vm2, %v962_v48, -inf  ;;  %v970_v57 = vsel %vm964_vm2, %v963_v49, 0.0 }
 0x108   : > { %v985_v58 = vsel %vm964_vm2, %v963_v49, -inf  ;;  %v986_v59 = vmax.f32 %v982_v53, %v983_v55 }
 0x109   : > { %v969_v60 = vadd.f32 %v968_v52, %v967_v54  ;;  %v987_v61 = vmax.f32 %v984_v56, %v985_v58 }
 0x10b   : > { %v971_v62 = vadd.f32 %v970_v57, %v969_v60  ;;  %v988_v12 = vmax.f32 %v986_v59, %v987_v61 }
 0x10d   : > { %v972_v21 = vrot.slane %v971_v62, 4  ;;  %v989_v63 = vrot.slane %v988_v12, 4 }
 0x10f   : > { %v973_v3 = vadd.f32 %v972_v21, %v971_v62  ;;  %v990_v13 = vmax.f32 %v988_v12, %v989_v63 }
 0x111   : > { %v974_v25 = vrot.slane %v973_v3, 2  ;;  %v991_v10 = vrot.slane %v990_v13, 2 }
 0x113   : > { %v975_v18 = vadd.f32 %v974_v25, %v973_v3  ;;  %v992_v19 = vmax.f32 %v990_v13, %v991_v10 }
 0x115   : > { %v976_v20 = vrot.slane %v975_v18, 1  ;;  %v993_v22 = vrot.slane %v992_v19, 1 }
 0x117   : > { %v977_v23 = vadd.f32 %v976_v20, %v975_v18  ;;  %v994_v24 = vmax.f32 %v992_v19, %v993_v22 }
 0x119   : > { %v979_v26 = vmul.f32 0.03125, %v977_v23  ;;  %995 = vst.msk [vmem:[%s2252_s24 + $0x1] sm:$0x1] %vm980_vm3, %v994_v24 }
 0x11b   : > { %981 = vst.msk [vmem:[%s2252_s24] sm:$0x1] %vm980_vm3, %v979_v26 }
 0x11c PF: > { %p1455_p7 = scmp.ne.s32.totalorder %s1947_s12, 4 }
 0x11e   : > { %999 = sbr.rel (%p1455_p7) target bundleno = 318 (0x13e), region = 80 }
 0x123   : > { %v1000_v27 = vld [vmem:[%s2244_s5] sm:$0xff]  ;;  %v1001_v29 = vld [vmem:[%s2244_s5 + $0x8] sm:$0xff]  ;;  %v1002_v30 = vld [vmem:[%s2244_s5 + $0x10] sm:$0xff]  ;;  %vm1006_vm4 = vcmask 523264   ;;  %vm1026_vm5 = vcmask 516096  }
 0x124   : > { %v1003_v31 = vld [vmem:[%s2244_s5 + $0x18] sm:$0xff]  ;;  %v1004_v11 = vld [vmem:[%s2244_s5 + $0x20] sm:$0xff]  ;;  %v1005_v32 = vld [vmem:[%s2244_s5 + $0x28] sm:$0xff]  ;;  %v1007_v0 = vsel %vm1006_vm4, %v1000_v27, 0.0  ;;  %v1008_v1 = vsel %vm1006_vm4, %v1001_v29, 0.0  ;;  %v1010_v28 = vsel %vm1006_vm4, %v1002_v30, 0.0 }
 0x125   : > { %v1009_v7 = vadd.f32 %v1008_v1, %v1007_v0  ;;  %v1012_v8 = vsel %vm1006_vm4, %v1003_v31, 0.0  ;;  %v1034_v17 = vsel %vm1006_vm4, %v1005_v32, -inf  ;;  %v1028_v33 = vsel %vm1006_vm4, %v1000_v27, -inf }
 0x126   : > { %v1029_v34 = vsel %vm1006_vm4, %v1001_v29, -inf  ;;  %v1030_v2 = vsel %vm1006_vm4, %v1002_v30, -inf  ;;  %v1031_v35 = vsel %vm1006_vm4, %v1003_v31, -inf  ;;  %v1032_v36 = vsel %vm1006_vm4, %v1004_v11, -inf }
 0x127   : > { %v1011_v9 = vadd.f32 %v1010_v28, %v1009_v7  ;;  %v1035_v4 = vmax.f32 %v1029_v34, %v1034_v17  ;;  %v1014_v14 = vsel %vm1006_vm4, %v1004_v11, 0.0  ;;  %v1033_v37 = vmax.f32 %v1028_v33, %v1032_v36 }
 0x128   : > { %v1037_v38 = vmax.f32 %v1030_v2, %v1031_v35  ;;  %v1016_v40 = vsel %vm1006_vm4, %v1005_v32, 0.0 }
 0x129   : > { %v1013_v39 = vadd.f32 %v1012_v8, %v1011_v9  ;;  %v1036_v5 = vmax.f32 %v1033_v37, %v1035_v4 }
 0x12b   : > { %v1015_v15 = vadd.f32 %v1014_v14, %v1013_v39  ;;  %v1038_v41 = vmax.f32 %v1036_v5, %v1037_v38 }
 0x12d   : > { %v1017_v42 = vadd.f32 %v1016_v40, %v1015_v15  ;;  %v1039_v6 = vrot.slane %v1038_v41, 4 }
 0x12f   : > { %v1018_v16 = vrot.slane %v1017_v42, 4  ;;  %v1040_v43 = vmax.f32 %v1038_v41, %v1039_v6 }
 0x131   : > { %v1019_v44 = vadd.f32 %v1018_v16, %v1017_v42  ;;  %v1041_v45 = vrot.slane %v1040_v43, 2 }
 0x133   : > { %v1020_v46 = vrot.slane %v1019_v44, 2  ;;  %v1042_v47 = vmax.f32 %v1040_v43, %v1041_v45 }
 0x135   : > { %v1021_v48 = vadd.f32 %v1020_v46, %v1019_v44  ;;  %v1043_v49 = vrot.slane %v1042_v47, 1 }
 0x137   : > { %v1022_v50 = vrot.slane %v1021_v48, 1  ;;  %v1044_v51 = vmax.f32 %v1042_v47, %v1043_v49 }
 0x139   : > { %v1023_v52 = vadd.f32 %v1022_v50, %v1021_v48  ;;  %1045 = vst.msk [vmem:[%s2254_s14 + $0x1] sm:$0x1] %vm1026_vm5, %v1044_v51 }
 0x13b   : > { %v1025_v53 = vmul.f32 0.020833334, %v1023_v52 }
 0x13d   : > { %1027 = vst.msk [vmem:[%s2254_s14] sm:$0x1] %vm1026_vm5, %v1025_v53 }
 0x13e PF: > { %s1475_s23 = sshll.u32 %s1951_s13, 6  ;;  %s2593_s21 = sld [smem:[#allocation36_spill]] }
 0x13f   : > { %s1095_s25 = sshll.u32 %s2248_s26, 4  ;;  %s2561_s29 = scalar_lea.sflag [#allocation13], %s2221_s8  ;;  %s1096_s25 = int_to_ptr.vmem [resolvable:$true] %s1095_s25 }
 0x140   : > { %s1747_s28 = scalar_lea.vmem %s1096_s25, 64  ;;  %s1977_s1 = smov [#allocation12]  }
 0x141   : > { %p1748_p8 = scmp.ne.s32.totalorder %s1096_s25, %s1747_s28  ;;  %s1751_s9 = sshll.u32 %s1977_s1, 4  ;;  %s1752_s9 = int_to_ptr.vmem [resolvable:$false] %s1751_s9 }
 0x142   : > { %s1753_s20 = scalar_lea.vmem %s1752_s9, 128  ;;  %p1754_p3 = scmp.lt.s32.totalorder %s1096_s25, %s1752_s9 }
 0x143   : > { %p1749_p12 = pnand %p1748_p8, %p2101_p10  ;;  %p1755_p4 = scmp.lt.s32.totalorder %s1753_s20, %s1747_s28 }
 0x144   : > { %s1093_s19 = scalar_lea.hbm %s2593_s21, %s1475_s23 }
 0x145   : > { %p1750_p13 = pneg %p1749_p12  ;;  %p1756_p5 = por %p1755_p4, %p1754_p3 }
 0x147   : > { %p1757_p6 = pnand %p1756_p5, %p1750_p13 }
 0x149   : > { %1760 = shalt.err (!%p1757_p6)
}
 0x14a   : > { %s1761_s16 = scalar_lea.hbm %s1093_s19, 64  ;;  %s1765_s22 = scalar_lea.hbm %s2593_s21, 128 }
 0x14b   : > { %p1762_p9 = scmp.ne.s32.totalorder %s1093_s19, %s1761_s16  ;;  %p1766_p2 = scmp.lt.s32.totalorder %s1093_s19, %s2593_s21 }
 0x14c   : > { %p1767_p7 = scmp.lt.s32.totalorder %s1765_s22, %s1761_s16 }
 0x14d   : > { %p1763_p0 = pnand %p1762_p9, %p2101_p10 }
 0x14e   : > { %p1768_p8 = por %p1767_p7, %p1766_p2 }
 0x14f   : > { %p1764_p1 = pneg %p1763_p0 }
 0x151   : > { %p1769_p12 = pnand %p1768_p8, %p1764_p1 }
 0x153   : > { %1772 = shalt.err (!%p1769_p12)
}
 0x154   : > { %1493 = dma.vmem_to_hbm [thread:$0]  (%p2101_p10), %s1096_s25, 64, %s1093_s19, %s2561_s29  }
 0x155   : > { %s2562_s26 = sshll.u32 %s1951_s13, 5  ;;  %s1122_s11 = sshll.u32 %s2252_s24, 4  ;;  %s1123_s11 = int_to_ptr.vmem [resolvable:$true] %s1122_s11 }
 0x156   : > { %s2594_s1 = sld [smem:[#allocation38_spill]]  ;;  %s1062_s20 = scalar_lea.sflag [#allocation16], %s2221_s8 }
 0x157   : > { %s1773_s16 = scalar_lea.vmem %s1123_s11, 32  ;;  %s1978_s18 = smov [#allocation15]  }
 0x158   : > { %p1774_p13 = scmp.ne.s32.totalorder %s1123_s11, %s1773_s16  ;;  %s1777_s17 = sshll.u32 %s1978_s18, 4  ;;  %s1778_s17 = int_to_ptr.vmem [resolvable:$false] %s1777_s17 }
 0x159   : > { %s1779_s22 = scalar_lea.vmem %s1778_s17, 64  ;;  %p1780_p5 = scmp.lt.s32.totalorder %s1123_s11, %s1778_s17 }
 0x15a   : > { %p1775_p3 = pnand %p1774_p13, %p2101_p10  ;;  %p1781_p6 = scmp.lt.s32.totalorder %s1779_s22, %s1773_s16 }
 0x15c   : > { %s1120_s9 = scalar_lea.hbm %s2594_s1, %s2562_s26  ;;  %p1776_p4 = pneg %p1775_p3 }
 0x15d   : > { %p1782_p9 = por %p1781_p6, %p1780_p5 }
 0x15f   : > { %p1783_p0 = pnand %p1782_p9, %p1776_p4 }
 0x161   : > { %1786 = shalt.err (!%p1783_p0)
}
 0x162   : > { %s1787_s24 = scalar_lea.hbm %s1120_s9, 32  ;;  %s1791_s30 = scalar_lea.hbm %s2594_s1, 64 }
 0x163   : > { %p1788_p1 = scmp.ne.s32.totalorder %s1120_s9, %s1787_s24  ;;  %p1792_p8 = scmp.lt.s32.totalorder %s1120_s9, %s2594_s1 }
 0x164   : > { %p1793_p12 = scmp.lt.s32.totalorder %s1791_s30, %s1787_s24 }
 0x165   : > { %p1789_p2 = pnand %p1788_p1, %p2101_p10 }
 0x166   : > { %p1794_p13 = por %p1793_p12, %p1792_p8 }
 0x167   : > { %p1790_p7 = pneg %p1789_p2 }
 0x169   : > { %p1795_p3 = pnand %p1794_p13, %p1790_p7 }
 0x16b   : > { %1798 = shalt.err (!%p1795_p3)
}
 0x16c   : > { %1495 = dma.vmem_to_hbm [thread:$0]  (%p2101_p10), %s1123_s11, 32, %s1120_s9, %s1062_s20  }
 0x16d   : > { %s1474_s28 = sshll.u32 %s1951_s13, 8  ;;  %s2595_s17 = sld [smem:[#allocation35_spill]] }
 0x16e   : > { %s1081_s24 = sshll.u32 %s2246_s6, 4  ;;  %s2596_s30 = sld [smem:[#allocation37_spill]]  ;;  %s1082_s24 = int_to_ptr.vmem [resolvable:$true] %s1081_s24 }
 0x16f   : > { %s1047_s29 = scalar_lea.sflag [#allocation4], %s2210_s27  ;;  %s1799_s26 = scalar_lea.vmem %s1082_s24, 256 }
 0x170   : > { %p1800_p4 = scmp.ne.s32.totalorder %s1082_s24, %s1799_s26  ;;  %s1979_s11 = smov [#allocation11]  }
 0x171   : > { %s1803_s9 = sshll.u32 %s1979_s11, 4  ;;  %s1804_s9 = int_to_ptr.vmem [resolvable:$false] %s1803_s9 }
 0x172   : > { %p1801_p5 = pnand %p1800_p4, %p2101_p10  ;;  %s1805_s16 = scalar_lea.vmem %s1804_s9, 512 }
 0x173   : > { %s2430_s22 = scalar_lea.hbm %s2595_s17, %s1474_s28  ;;  %p1806_p9 = scmp.lt.s32.totalorder %s1082_s24, %s1804_s9 }
 0x174   : > { %s2597_s5 = smov %s2596_s30  ;;  %s2438_s7 = scalar_lea.hbm %s2596_s30, %s1475_s23 }
 0x175   : > { %p1802_p6 = pneg %p1801_p5  ;;  %p1807_p0 = scmp.lt.s32.totalorder %s1805_s16, %s1799_s26 }
 0x177   : > { %p1808_p1 = por %p1807_p0, %p1806_p9 }
 0x179   : > { %p1809_p2 = pnand %p1808_p1, %p1802_p6 }
 0x17b   : > { %1812 = shalt.err (!%p1809_p2)
}
 0x17c   : > { %s1813_s6 = scalar_lea.hbm %s2430_s22, 256  ;;  %s1817_s28 = scalar_lea.hbm %s2595_s17, 512 }
 0x17d   : > { %p1814_p7 = scmp.ne.s32.totalorder %s2430_s22, %s1813_s6  ;;  %p1818_p13 = scmp.lt.s32.totalorder %s2430_s22, %s2595_s17 }
 0x17e   : > { %p1819_p3 = scmp.lt.s32.totalorder %s1817_s28, %s1813_s6 }
 0x17f   : > { %p1815_p8 = pnand %p1814_p7, %p2101_p10 }
 0x180   : > { %p1820_p4 = por %p1819_p3, %p1818_p13 }
 0x181   : > { %p1816_p12 = pneg %p1815_p8 }
 0x183   : > { %p1821_p5 = pnand %p1820_p4, %p1816_p12 }
 0x185   : > { %1824 = shalt.err (!%p1821_p5)
}
 0x186   : > { %1492 = dma.vmem_to_hbm [thread:$0]  (%p2101_p10), %s1082_s24, 256, %s2430_s22, %s1047_s29  }
 0x187   : > { %s1109_s26 = sshll.u32 %s2250_s3, 4  ;;  %s2598_s25 = sshll.u32 %s1951_s13, 5  ;;  %s1110_s26 = int_to_ptr.vmem [resolvable:$true] %s1109_s26 }
 0x188   : > { %s2599_s9 = sld [smem:[#allocation39_spill]]  ;;  %s1135_s6 = sshll.u32 %s2254_s14, 4  ;;  %s1136_s6 = int_to_ptr.vmem [resolvable:$true] %s1135_s6 }
 0x189   : > { %s1825_s27 = scalar_lea.vmem %s1110_s26, 64  ;;  %s1980_s23 = smov [#allocation14]  }
 0x18a   : > { %p1826_p6 = scmp.ne.s32.totalorder %s1110_s26, %s1825_s27  ;;  %s1829_s28 = sshll.u32 %s1980_s23, 4  ;;  %s1830_s28 = int_to_ptr.vmem [resolvable:$false] %s1829_s28 }
 0x18b   : > { %s1831_s18 = scalar_lea.vmem %s1830_s28, 128  ;;  %p1832_p1 = scmp.lt.s32.totalorder %s1110_s26, %s1830_s28 }
 0x18c   : > { %p1827_p9 = pnand %p1826_p6, %p2101_p10  ;;  %p1833_p2 = scmp.lt.s32.totalorder %s1831_s18, %s1825_s27 }
 0x18e   : > { %s2463_s16 = scalar_lea.hbm %s2599_s9, %s2598_s25  ;;  %p1828_p0 = pneg %p1827_p9 }
 0x18f   : > { %p1834_p7 = por %p1833_p2, %p1832_p1 }
 0x191   : > { %p1835_p8 = pnand %p1834_p7, %p1828_p0 }
 0x193   : > { %1838 = shalt.err (!%p1835_p8)
}
 0x194   : > { %s1839_s13 = scalar_lea.hbm %s2438_s7, 64  ;;  %s1843_s29 = scalar_lea.hbm %s2597_s5, 128 }
 0x195   : > { %p1840_p12 = scmp.ne.s32.totalorder %s2438_s7, %s1839_s13  ;;  %p1844_p4 = scmp.lt.s32.totalorder %s2438_s7, %s2597_s5 }
 0x196   : > { %p1845_p5 = scmp.lt.s32.totalorder %s1843_s29, %s1839_s13 }
 0x197   : > { %p1841_p13 = pnand %p1840_p12, %p2101_p10 }
 0x198   : > { %p1846_p6 = por %p1845_p5, %p1844_p4 }
 0x199   : > { %p1842_p3 = pneg %p1841_p13 }
 0x19b   : > { %p1847_p9 = pnand %p1846_p6, %p1842_p3 }
 0x19d   : > { %1850 = shalt.err (!%p1847_p9)
}
 0x19e   : > { %s2600_s19 = scalar_lea.sflag [#allocation13], %s2221_s8  ;;  %s1851_s25 = scalar_lea.vmem %s1136_s6, 32 }
 0x19f   : > { %1494 = dma.vmem_to_hbm [thread:$0]  (%p2101_p10), %s1110_s26, 64, %s2438_s7, %s2600_s19  }
 0x1a0   : > { %p1852_p0 = scmp.ne.s32.totalorder %s1136_s6, %s1851_s25  ;;  %s1981_s30 = smov [#allocation17]  }
 0x1a1   : > { %s1855_s11 = sshll.u32 %s1981_s30, 4  ;;  %s1856_s11 = int_to_ptr.vmem [resolvable:$false] %s1855_s11 }
 0x1a2   : > { %p1853_p1 = pnand %p1852_p0, %p2101_p10  ;;  %s1857_s27 = scalar_lea.vmem %s1856_s11, 64 }
 0x1a3   : > { %p1858_p7 = scmp.lt.s32.totalorder %s1136_s6, %s1856_s11  ;;  %p1859_p8 = scmp.lt.s32.totalorder %s1857_s27, %s1851_s25 }
 0x1a4   : > { %p1854_p2 = pneg %p1853_p1 }
 0x1a5   : > { %p1860_p12 = por %p1859_p8, %p1858_p7 }
 0x1a7   : > { %p1861_p13 = pnand %p1860_p12, %p1854_p2 }
 0x1a9   : > { %1864 = shalt.err (!%p1861_p13)
}
 0x1aa   : > { %s1865_s7 = scalar_lea.hbm %s2463_s16, 32  ;;  %s1869_s28 = scalar_lea.hbm %s2599_s9, 64 }
 0x1ab   : > { %p1866_p3 = scmp.ne.s32.totalorder %s2463_s16, %s1865_s7  ;;  %p1870_p6 = scmp.lt.s32.totalorder %s2463_s16, %s2599_s9 }
 0x1ac   : > { %p1871_p9 = scmp.lt.s32.totalorder %s1869_s28, %s1865_s7 }
 0x1ad   : > { %p1867_p4 = pnand %p1866_p3, %p2101_p10 }
 0x1ae   : > { %p1872_p0 = por %p1871_p9, %p1870_p6 }
 0x1af   : > { %p1868_p5 = pneg %p1867_p4 }
 0x1b1   : > { %p1873_p1 = pnand %p1872_p0, %p1868_p5 }
 0x1b3   : > { %1876 = shalt.err (!%p1873_p1)
}
 0x1b4   : > { %1496 = dma.vmem_to_hbm [thread:$0]  (%p2101_p10), %s1136_s6, 32, %s2463_s16, %s1062_s20  }
 0x1b5 PF: > { %s2601_s3 = sld [smem:[#allocation27_spill]] }
 0x1b6   : > { %s2602_s14 = sld [smem:[#allocation24_spill]] }
 0x1bb   : > { %p1535_p2 = scmp.ge.s32.totalorder %s2601_s3, 2 }
 0x1bc   : > { %s1147_s22 = sand.u32 1, %s2602_s14  }
 0x1bd   : > { %p1519_p7 = pnand %p1535_p2, %p2107_p11  ;;  %s1148_s24 = scalar_lea.sflag [#allocation4], %s1147_s22 }
 0x1bf   : > { %p1520_p8 = pneg %p1519_p7 }
 0x1c1   : > { %1922 = dma.done.wait (%p1520_p8), %s1148_s24, 256  }
 0x1c2   : > { %1924 = vsyncadd (%p1520_p8), %s1148_s24, 4294967040  ;;  %s2604_s19 = sadd.s32 4294967294, %s2601_s3  }
 0x1c3   : > { %s1156_s25 = sand.u32 1, %s2604_s19  }
 0x1c4   : > { %s1157_s12 = scalar_lea.sflag [#allocation13], %s1156_s25 }
 0x1c5   : > { %1926 = dma.done.wait (%p1520_p8), %s1157_s12, 128  }
 0x1c6   : > { %1928 = vsyncadd (%p1520_p8), %s1157_s12, 4294967168  ;;  %s1175_s8 = scalar_lea.sflag [#allocation16], %s1156_s25 }
 0x1c7   : > { %1930 = dma.done.wait (%p1520_p8), %s1175_s8, 64  }
 0x1c8   : > { %1932 = vsyncadd (%p1520_p8), %s1175_s8, 4294967232  ;;  %s38_s16 = sadd.s32 1, %s2601_s3   ;;  %s2605_s20 = sld [smem:[#allocation25_spill]] }
 0x1c9   : > { %p35_p10 = scmp.ge.s32.totalorder %s38_s16, 12   ;;  %s2606_s11 = sld [smem:[#allocation32_spill]] }
 0x1ca   : > { %s2607_s12 = sld [smem:[#allocation26_spill]]  ;;  %s2610_s30 = smov %s1939_s10 }
 0x1cb   : > { %s2608_s14 = sld [smem:[#allocation28_spill]]  ;;  %s2612_s13 = smov %s1959_s15 }
 0x1cc   : > { %s2609_s6 = sld [smem:[#allocation29_spill]] }
 0x1ce   : > { %s2611_s10 = smov %s2605_s20  ;;  %37 = sbr.rel (!%p35_p10) target bundleno = 23 (0x17), region = 220 }
 0x1d2   : > { %s2613_s15 = smov %s2609_s6 }
 0x1d3   :  { %1189 = vsyncpa [#allocation3], 1 }
 0x1d4   :  { %1191 = vsyncpa [#allocation3 + $0x1], 1 }
 0x1d5   :  { %1192 = vsyncpa [#allocation6], 1 }
 0x1d6   :  { %1194 = vsyncpa [#allocation6 + $0x1], 1 }
 0x1d7   :  { %1195 = vsyncpa [#allocation9], 1 }
 0x1d8   :  { %1197 = vsyncpa [#allocation9 + $0x1], 1 }
 0x1d9   :  { %1198 = vsyncpa [#allocation4], 1 }
 0x1da   :  { %1200 = vsyncpa [#allocation4 + $0x1], 1 }
 0x1db   :  { %1201 = vsyncpa [#allocation13], 1 }
 0x1dc   :  { %1203 = vsyncpa [#allocation13 + $0x1], 1 }
 0x1dd   :  { %1204 = vsyncpa [#allocation16], 1 }
 0x1de   :  { %1206 = vsyncpa [#allocation16 + $0x1], 1 }

</bundles_post_ra>
